<compile_context>
chip_gen: v7x
topology: tpu7x:2x2x1
jax: 0.10.0
libtpu: 0.0.40
codegen_flags: <defaults>
</compile_context>

<pallas_src>
import functools
import math

import jax
import jax.numpy as jnp
from jax.experimental import pallas as pl
from jax.experimental.pallas import tpu as pltpu


def _round_up(x: int, m: int) -> int:
    return (x + m - 1) // m * m


def _projection_kernel(x_ref, w1_ref, w2_ref, gamma_ref, beta_ref, o_ref, *,
                       d_out_true: int):
    # x_ref:     (TM, d_in_p)    bf16 tile of input rows
    # w1_ref:    (d_in_p, d_out_p)  bf16 (resident across the grid)
    # w2_ref:    (d_out_p, d_out_p) bf16 (resident across the grid)
    # gamma_ref: (1, d_out_p)    f32
    # beta_ref:  (1, d_out_p)    f32
    # o_ref:     (TM, d_out_p)   f32
    x = x_ref[...]

    # linear1 (no bias): bf16 operands, f32 accumulation on the MXU.
    embed1 = jnp.dot(x, w1_ref[...], preferred_element_type=jnp.float32)

    # exact (erf-based) GELU in f32, matching F.gelu default.
    h = 0.5 * embed1 * (1.0 + jax.lax.erf(embed1 * (1.0 / math.sqrt(2.0))))

    # linear2 (no bias); dropout is identity in eval mode.
    embed2 = jnp.dot(h.astype(jnp.bfloat16), w2_ref[...],
                     preferred_element_type=jnp.float32)

    y = embed1 + embed2  # f32

    d_out_p = y.shape[-1]
    if d_out_true == d_out_p:
        # Unpadded feature dim: plain LayerNorm over the last axis.
        mean = jnp.mean(y, axis=-1, keepdims=True)
        centered = y - mean
        var = jnp.mean(centered * centered, axis=-1, keepdims=True)
    else:
        # Padded feature dim: padded columns of y are exactly zero (zero-padded
        # weights), but mean/var must use the true d_out and exclude padding.
        lane = jax.lax.broadcasted_iota(jnp.int32, (1, d_out_p), 1)
        mask = (lane < d_out_true).astype(jnp.float32)
        inv_n = 1.0 / float(d_out_true)
        mean = jnp.sum(y, axis=-1, keepdims=True) * inv_n
        centered = (y - mean) * mask
        var = jnp.sum(centered * centered, axis=-1, keepdims=True) * inv_n

    inv_std = jax.lax.rsqrt(var + 1e-5)   # eps=1e-5, PyTorch LayerNorm default
    normed = centered * inv_std

    o_ref[...] = (normed * gamma_ref[...] + beta_ref[...]).astype(o_ref.dtype)


def projection_forward(x, w1, w2, gamma, beta, *, tile_m=256,
                       vmem_limit_bytes=64 * 1024 * 1024):
    """Fused Projection forward.

    x:     (rows, d_in)   f32
    w1:    (d_out, d_in)  f32  (PyTorch nn.Linear layout)
    w2:    (d_out, d_out) f32
    gamma: (d_out,)       f32  (LayerNorm weight)
    beta:  (d_out,)       f32  (LayerNorm bias)
    returns (rows, d_out) f32
    """
    rows, d_in = x.shape
    d_out = w1.shape[0]

    # Lane-dense feature dims (multiples of 128).
    d_in_p = _round_up(d_in, 128)
    d_out_p = _round_up(d_out, 128)

    # Large M tile for MXU utilisation, but never bigger than the (padded) work.
    tile_m_eff = min(tile_m, _round_up(rows, 8))
    rows_p = _round_up(rows, tile_m_eff)

    # Pad + cast matmul operands to bf16 (f32 accumulation inside the kernel).
    x_p = jnp.pad(x.astype(jnp.bfloat16),
                  ((0, rows_p - rows), (0, d_in_p - d_in)))
    w1_t = jnp.pad(w1.T.astype(jnp.bfloat16),
                   ((0, d_in_p - d_in), (0, d_out_p - d_out)))
    w2_t = jnp.pad(w2.T.astype(jnp.bfloat16),
                   ((0, d_out_p - d_out), (0, d_out_p - d_out)))
    gamma_p = jnp.pad(gamma.astype(jnp.float32).reshape(1, d_out),
                      ((0, 0), (0, d_out_p - d_out)))
    beta_p = jnp.pad(beta.astype(jnp.float32).reshape(1, d_out),
                     ((0, 0), (0, d_out_p - d_out)))

    grid = (rows_p // tile_m_eff,)

    cost = pl.CostEstimate(
        flops=2 * rows_p * d_in_p * d_out_p + 2 * rows_p * d_out_p * d_out_p,
        transcendentals=rows_p * d_out_p,  # erf in GELU
        bytes_accessed=(x_p.size * 2 + w1_t.size * 2 + w2_t.size * 2
                        + gamma_p.size * 4 + beta_p.size * 4
                        + rows_p * d_out_p * 4),
    )

    kernel = functools.partial(_projection_kernel, d_out_true=d_out)

    out = pl.pallas_call(
        kernel,
        out_shape=jax.ShapeDtypeStruct((rows_p, d_out_p), jnp.float32),
        grid_spec=pltpu.PrefetchScalarGridSpec(
            num_scalar_prefetch=0,
            grid=grid,
            in_specs=[
                pl.BlockSpec((tile_m_eff, d_in_p), lambda i: (i, 0)),
                pl.BlockSpec((d_in_p, d_out_p), lambda i: (0, 0)),
                pl.BlockSpec((d_out_p, d_out_p), lambda i: (0, 0)),
                pl.BlockSpec((1, d_out_p), lambda i: (0, 0)),
                pl.BlockSpec((1, d_out_p), lambda i: (0, 0)),
            ],
            out_specs=pl.BlockSpec((tile_m_eff, d_out_p), lambda i: (i, 0)),
        ),
        compiler_params=pltpu.CompilerParams(
            dimension_semantics=("parallel",),
            vmem_limit_bytes=vmem_limit_bytes,
        ),
        cost_estimate=cost,
    )(x_p, w1_t, w2_t, gamma_p, beta_p)

    return out[:rows, :d_out]


if __name__ == "__main__":
    # Small shapes: batch=2, seq=8 -> rows=16, d_in=32, d_out=64
    batch, seq, d_in, d_out = 2, 8, 32, 64

    key = jax.random.PRNGKey(0)
    kx, kw1, kw2 = jax.random.split(key, 3)

    x = jax.random.normal(kx, (batch, seq, d_in), dtype=jnp.float32)

    # Deterministic parameter init (Kaiming-uniform-like scale, matching
    # nn.Linear weight shapes: (d_out, d_in) and (d_out, d_out)).
    bound1 = 1.0 / math.sqrt(d_in)
    bound2 = 1.0 / math.sqrt(d_out)
    w1 = jax.random.uniform(kw1, (d_out, d_in), jnp.float32, -bound1, bound1)
    w2 = jax.random.uniform(kw2, (d_out, d_out), jnp.float32, -bound2, bound2)
    gamma = jnp.ones((d_out,), jnp.float32)   # LayerNorm weight init
    beta = jnp.zeros((d_out,), jnp.float32)   # LayerNorm bias init

    x_flat = x.reshape(batch * seq, d_in)
    out = projection_forward(x_flat, w1, w2, gamma, beta)
    out = out.reshape(batch, seq, d_out)
    jax.block_until_ready(out)

    # Reference check in plain f32 JAX (same math, eval-mode dropout).
    # Looser tolerance because the kernel uses bf16 matmul operands
    # (f32 accumulation); LayerNorm math is f32 in both.
    embed1 = x @ w1.T
    h = 0.5 * embed1 * (1.0 + jax.lax.erf(embed1 / math.sqrt(2.0)))
    embed2 = h @ w2.T
    y = embed1 + embed2
    mean = y.mean(-1, keepdims=True)
    var = ((y - mean) ** 2).mean(-1, keepdims=True)
    ref = (y - mean) / jnp.sqrt(var + 1e-5) * gamma + beta

    assert jnp.allclose(out, ref, atol=5e-2, rtol=5e-2), "mismatch vs reference"
    print("KERNEL_OK")
</pallas_src>

<mosaic_0001>
module attributes {stable_mosaic.version = 11 : i64} {
  func.func @_projection_kernel(%arg0: i32, %arg1: memref<16x128xbf16, #tpu.memory_space<vmem>>, %arg2: memref<128x128xbf16, #tpu.memory_space<vmem>>, %arg3: memref<128x128xbf16, #tpu.memory_space<vmem>>, %arg4: memref<1x128xf32, #tpu.memory_space<vmem>>, %arg5: memref<1x128xf32, #tpu.memory_space<vmem>>, %arg6: memref<16x128xf32, #tpu.memory_space<vmem>>) attributes {dimension_semantics = [#tpu.dimension_semantics<parallel>], iteration_bounds = array<i64: 1>, scalar_prefetch = 0 : i64, scratch_operands = 0 : i64, tpu.core_type = #tpu.core_type<tc>, window_params = [{transform_indices = @transform_0, window_bounds = array<i64: 16, 128>}, {pipeline_mode = #tpu.pipeline_mode<synchronous>, transform_indices = @transform_1, window_bounds = array<i64: 128, 128>}, {pipeline_mode = #tpu.pipeline_mode<synchronous>, transform_indices = @transform_2, window_bounds = array<i64: 128, 128>}, {pipeline_mode = #tpu.pipeline_mode<synchronous>, transform_indices = @transform_3, window_bounds = array<i64: 1, 128>}, {pipeline_mode = #tpu.pipeline_mode<synchronous>, transform_indices = @transform_4, window_bounds = array<i64: 1, 128>}, {transform_indices = @transform_5, window_bounds = array<i64: 16, 128>}]} {
    %c0 = arith.constant 0 : index
    %c0_0 = arith.constant 0 : index
    %0 = vector.load %arg1[%c0, %c0_0] : memref<16x128xbf16, #tpu.memory_space<vmem>>, vector<16x128xbf16>
    %c0_1 = arith.constant 0 : index
    %c0_2 = arith.constant 0 : index
    %1 = vector.load %arg2[%c0_1, %c0_2] : memref<128x128xbf16, #tpu.memory_space<vmem>>, vector<128x128xbf16>
    %cst = arith.constant dense<0.000000e+00> : vector<16x128xf32>
    %2 = tpu.matmul %0, %1, %cst {dimension_numbers = #tpu.dot_dimension_numbers<[1], [0], [0], [1], [0, 0, 1, 1], [], []>} : vector<16x128xbf16>, vector<128x128xbf16>, vector<16x128xf32> -> vector<16x128xf32>
    %cst_3 = arith.constant 5.000000e-01 : f32
    %3 = vector.broadcast %cst_3 : f32 to vector<16x128xf32>
    %4 = arith.mulf %3, %2 : vector<16x128xf32>
    %cst_4 = arith.constant 0.707106769 : f32
    %5 = vector.broadcast %cst_4 : f32 to vector<16x128xf32>
    %6 = arith.mulf %2, %5 : vector<16x128xf32>
    %7 = math.erf %6 : vector<16x128xf32>
    %cst_5 = arith.constant 1.000000e+00 : f32
    %8 = vector.broadcast %cst_5 : f32 to vector<16x128xf32>
    %9 = arith.addf %8, %7 : vector<16x128xf32>
    %10 = arith.mulf %4, %9 : vector<16x128xf32>
    %11 = arith.truncf %10 : vector<16x128xf32> to vector<16x128xbf16>
    %c0_6 = arith.constant 0 : index
    %c0_7 = arith.constant 0 : index
    %12 = vector.load %arg3[%c0_6, %c0_7] : memref<128x128xbf16, #tpu.memory_space<vmem>>, vector<128x128xbf16>
    %cst_8 = arith.constant dense<0.000000e+00> : vector<16x128xf32>
    %13 = tpu.matmul %11, %12, %cst_8 {dimension_numbers = #tpu.dot_dimension_numbers<[1], [0], [0], [1], [0, 0, 1, 1], [], []>} : vector<16x128xbf16>, vector<128x128xbf16>, vector<16x128xf32> -> vector<16x128xf32>
    %14 = arith.addf %2, %13 : vector<16x128xf32>
    %15 = tpu.iota {dimensions = array<i32: 1>} : vector<1x128xi32>
    %c64_i32 = arith.constant 64 : i32
    %16 = vector.broadcast %c64_i32 : i32 to vector<1x128xi32>
    %17 = arith.cmpi slt, %15, %16 : vector<1x128xi32>
    %18 = arith.extui %17 : vector<1x128xi1> to vector<1x128xi32>
    %19 = arith.sitofp %18 : vector<1x128xi32> to vector<1x128xf32>
    %cst_9 = arith.constant dense<0.000000e+00> : vector<16xf32>
    %20 = vector.multi_reduction <add>, %14, %cst_9 [1] : vector<16x128xf32> to vector<16xf32>
    %21 = vector.shape_cast %20 : vector<16xf32> to vector<16x1xf32>
    %cst_10 = arith.constant 1.562500e-02 : f32
    %22 = vector.broadcast %cst_10 : f32 to vector<16x1xf32>
    %23 = arith.mulf %21, %22 : vector<16x1xf32>
    %24 = vector.broadcast %23 : vector<16x1xf32> to vector<16x128xf32>
    %25 = arith.subf %14, %24 : vector<16x128xf32>
    %26 = vector.broadcast %19 : vector<1x128xf32> to vector<16x128xf32>
    %27 = arith.mulf %25, %26 : vector<16x128xf32>
    %28 = arith.mulf %27, %27 : vector<16x128xf32>
    %cst_11 = arith.constant dense<0.000000e+00> : vector<16xf32>
    %29 = vector.multi_reduction <add>, %28, %cst_11 [1] : vector<16x128xf32> to vector<16xf32>
    %30 = vector.shape_cast %29 : vector<16xf32> to vector<16x1xf32>
    %cst_12 = arith.constant 1.562500e-02 : f32
    %31 = vector.broadcast %cst_12 : f32 to vector<16x1xf32>
    %32 = arith.mulf %30, %31 : vector<16x1xf32>
    %cst_13 = arith.constant 9.99999974E-6 : f32
    %33 = vector.broadcast %cst_13 : f32 to vector<16x1xf32>
    %34 = arith.addf %32, %33 : vector<16x1xf32>
    %35 = math.rsqrt %34 : vector<16x1xf32>
    %36 = vector.broadcast %35 : vector<16x1xf32> to vector<16x128xf32>
    %37 = arith.mulf %27, %36 : vector<16x128xf32>
    %c0_14 = arith.constant 0 : index
    %c0_15 = arith.constant 0 : index
    %38 = vector.load %arg4[%c0_14, %c0_15] : memref<1x128xf32, #tpu.memory_space<vmem>>, vector<1x128xf32>
    %39 = vector.broadcast %38 : vector<1x128xf32> to vector<16x128xf32>
    %40 = arith.mulf %37, %39 : vector<16x128xf32>
    %c0_16 = arith.constant 0 : index
    %c0_17 = arith.constant 0 : index
    %41 = vector.load %arg5[%c0_16, %c0_17] : memref<1x128xf32, #tpu.memory_space<vmem>>, vector<1x128xf32>
    %42 = vector.broadcast %41 : vector<1x128xf32> to vector<16x128xf32>
    %43 = arith.addf %40, %42 : vector<16x128xf32>
    %c0_18 = arith.constant 0 : index
    %c0_19 = arith.constant 0 : index
    %44 = vector.load %arg6[%c0_18, %c0_19] : memref<16x128xf32, #tpu.memory_space<vmem>>, vector<16x128xf32>
    tpu.vector_store %arg6[%c0_18, %c0_19], %43 {strides = array<i32>} : memref<16x128xf32, #tpu.memory_space<vmem>>, vector<16x128xf32>,
    return
  }
  func.func @transform_0(%arg0: i32) -> (i32, i32) {
    %c0_i32 = arith.constant 0 : i32
    %c0_i32_0 = arith.constant 0 : i32
    return %arg0, %c0_i32 : i32, i32
  }
  func.func @transform_1(%arg0: i32) -> (i32, i32) {
    %c0_i32 = arith.constant 0 : i32
    %c0_i32_0 = arith.constant 0 : i32
    %c0_i32_1 = arith.constant 0 : i32
    return %c0_i32, %c0_i32_0 : i32, i32
  }
  func.func @transform_2(%arg0: i32) -> (i32, i32) {
    %c0_i32 = arith.constant 0 : i32
    %c0_i32_0 = arith.constant 0 : i32
    %c0_i32_1 = arith.constant 0 : i32
    return %c0_i32, %c0_i32_0 : i32, i32
  }
  func.func @transform_3(%arg0: i32) -> (i32, i32) {
    %c0_i32 = arith.constant 0 : i32
    %c0_i32_0 = arith.constant 0 : i32
    %c0_i32_1 = arith.constant 0 : i32
    return %c0_i32, %c0_i32_0 : i32, i32
  }
  func.func @transform_4(%arg0: i32) -> (i32, i32) {
    %c0_i32 = arith.constant 0 : i32
    %c0_i32_0 = arith.constant 0 : i32
    %c0_i32_1 = arith.constant 0 : i32
    return %c0_i32, %c0_i32_0 : i32, i32
  }
  func.func @transform_5(%arg0: i32) -> (i32, i32) {
    %c0_i32 = arith.constant 0 : i32
    %c0_i32_0 = arith.constant 0 : i32
    return %arg0, %c0_i32 : i32, i32
  }
}

</mosaic_0001>

<bundles_post_ra>
// kernel: tpu_custom_call.1
= control target key start
LH: loop header
LB: loop body
LE: loop exit
PB: predicated region body
PF: predicated region fallthrough
CT: control target
= control target key end

     0   :  { %10 = vsyncpa [#allocation3], 0  ;;  %s797_s0 = inlined_call_operand.hbm [shape: bf16[16,128], index: 0, kind: input, shape index: {}]   ;;  %s798_s1 = inlined_call_operand.hbm [shape: bf16[128,128], index: 1, kind: input, shape index: {}]   ;;  %s799_s2 = inlined_call_operand.hbm [shape: bf16[128,128], index: 2, kind: input, shape index: {}]   ;;  %s800_s3 = inlined_call_operand.hbm [shape: f32[1,128], index: 3, kind: input, shape index: {}]   ;;  %s801_s4 = inlined_call_operand.hbm [shape: f32[1,128], index: 4, kind: input, shape index: {}]   ;;  %s802_s5 = inlined_call_operand.hbm [shape: f32[16,128], index: 5, kind: output, shape index: {}]  }
   0x1   :  { %11 = vsyncpa [#allocation6], 0 }
   0x2   :  { %12 = vsyncpa [#allocation9], 0 }
   0x3   :  { %13 = vsyncpa [#allocation4], 0  ;;  %s640_s18 = smov [#allocation5]   ;;  %s641_s20 = smov [#allocation8]  }
   0x4   :  { %s31_s19 = sshll.u32 %s640_s18, 4  ;;  %s56_s21 = sshll.u32 %s641_s20, 4  ;;  %s32_s19 = int_to_ptr.vmem [resolvable:$true] %s31_s19  ;;  %s682_s21 = int_to_ptr.vmem [resolvable:$true] %s56_s21 }
   0x5   :  { %s500_s24 = scalar_lea.hbm %s798_s1, 1024 }
   0x6   :  { %p501_p0 = scmp.ne.s32.totalorder %s798_s1, %s500_s24  ;;  %p504_p1 = scmp.lt.u32.totalorder %s500_s24, %s798_s1 }
   0x8   :  { %p506_p2 = pnand %p504_p1, %p501_p0 }
   0xa   :  { %509 = shalt.err (!%p506_p2)
}
   0xb   :  { %s510_s29 = scalar_lea.vmem %s32_s19, 1024  ;;  %p515_p4 = scmp.lt.s32.totalorder %s32_s19, %s32_s19 }
   0xc   :  { %p511_p3 = scmp.ne.s32.totalorder %s32_s19, %s510_s29  ;;  %p516_p5 = scmp.lt.s32.totalorder %s510_s29, %s510_s29 }
   0xe   :  { %p517_p6 = por %p516_p5, %p515_p4 }
  0x10   :  { %p518_p7 = pnand %p517_p6, %p511_p3 }
  0x12   :  { %521 = shalt.err (!%p518_p7)
}
  0x13   :  { %s642_s30 = smov 64   ;;  %s643_s6 = smov 4  }
  0x14   :  { %37 = dma.hbm_to_vmem [thread:$0]  %s798_s1, 1024, %s32_s19, [#allocation6], %s642_s30, %s642_s30, %s643_s6  }
  0x15   :  { %s522_s11 = scalar_lea.hbm %s800_s3, 16 }
  0x16   :  { %p523_p8 = scmp.ne.s32.totalorder %s800_s3, %s522_s11  ;;  %p526_p9 = scmp.lt.u32.totalorder %s522_s11, %s800_s3 }
  0x18   :  { %p528_p10 = pnand %p526_p9, %p523_p8 }
  0x1a   :  { %531 = shalt.err (!%p528_p10)
}
  0x1b   :  { %s532_s16 = scalar_lea.vmem %s682_s21, 16  ;;  %s536_s1 = scalar_lea.vmem %s682_s21, 32 }
  0x1c   :  { %p533_p11 = scmp.ne.s32.totalorder %s682_s21, %s532_s16  ;;  %p537_p12 = scmp.lt.s32.totalorder %s682_s21, %s682_s21 }
  0x1d   :  { %p538_p13 = scmp.lt.s32.totalorder %s536_s1, %s532_s16 }
  0x1f   :  { %p539_p0 = por %p538_p13, %p537_p12 }
  0x21   :  { %p540_p1 = pnand %p539_p0, %p533_p11 }
  0x23   :  { %543 = shalt.err (!%p540_p1)
}
  0x24   :  { %59 = dma.hbm_to_vmem [thread:$0]  %s800_s3, 16, %s682_s21, [#allocation9]  }
  0x25   :  { %s644_s19 = smov [#allocation2]   ;;  %s645_s22 = smov [#allocation7]  }
  0x26   :  { %s19_s20 = sshll.u32 %s644_s19, 4  ;;  %s43_s23 = sshll.u32 %s645_s22, 4  ;;  %s20_s20 = int_to_ptr.vmem [resolvable:$true] %s19_s20  ;;  %s717_s23 = int_to_ptr.vmem [resolvable:$true] %s43_s23 }
  0x27   :  { %s544_s26 = scalar_lea.hbm %s797_s0, 128 }
  0x28   :  { %p545_p2 = scmp.ne.s32.totalorder %s797_s0, %s544_s26  ;;  %p548_p3 = scmp.lt.u32.totalorder %s544_s26, %s797_s0 }
  0x2a   :  { %p550_p4 = pnand %p548_p3, %p545_p2 }
  0x2c   :  { %553 = shalt.err (!%p550_p4)
}
  0x2d   :  { %s554_s3 = scalar_lea.vmem %s20_s20, 128  ;;  %p559_p6 = scmp.lt.s32.totalorder %s20_s20, %s20_s20 }
  0x2e   :  { %p555_p5 = scmp.ne.s32.totalorder %s20_s20, %s554_s3  ;;  %p560_p7 = scmp.lt.s32.totalorder %s554_s3, %s554_s3 }
  0x30   :  { %p561_p8 = por %p560_p7, %p559_p6 }
  0x32   :  { %p562_p9 = pnand %p561_p8, %p555_p5 }
  0x34   :  { %565 = shalt.err (!%p562_p9)
}
  0x35   :  { %25 = dma.hbm_to_vmem [thread:$0]  %s797_s0, 128, %s20_s20, [#allocation3], %s642_s30, %s642_s30, %s643_s6  }
  0x36   :  { %s566_s11 = scalar_lea.hbm %s799_s2, 1024 }
  0x37   :  { %p567_p10 = scmp.ne.s32.totalorder %s799_s2, %s566_s11  ;;  %p570_p11 = scmp.lt.u32.totalorder %s566_s11, %s799_s2 }
  0x39   :  { %p572_p12 = pnand %p570_p11, %p567_p10 }
  0x3b   :  { %575 = shalt.err (!%p572_p12)
}
  0x3c   :  { %s576_s16 = scalar_lea.vmem %s717_s23, 1024  ;;  %p581_p0 = scmp.lt.s32.totalorder %s717_s23, %s717_s23 }
  0x3d   :  { %p577_p13 = scmp.ne.s32.totalorder %s717_s23, %s576_s16  ;;  %p582_p1 = scmp.lt.s32.totalorder %s576_s16, %s576_s16 }
  0x3f   :  { %p583_p2 = por %p582_p1, %p581_p0 }
  0x41   :  { %p584_p3 = pnand %p583_p2, %p577_p13 }
  0x43   :  { %587 = shalt.err (!%p584_p3)
}
  0x44   :  { %49 = dma.hbm_to_vmem [thread:$0]  %s799_s2, 1024, %s717_s23, [#allocation6], %s642_s30, %s642_s30, %s643_s6  }
  0x45   :  { %s646_s17 = smov [#allocation10]   ;;  %s588_s22 = scalar_lea.hbm %s801_s4, 16 }
  0x46   :  { %s66_s18 = sshll.u32 %s646_s17, 4  ;;  %p589_p4 = scmp.ne.s32.totalorder %s801_s4, %s588_s22  ;;  %s67_s18 = int_to_ptr.vmem [resolvable:$true] %s66_s18 }
  0x47   :  { %p592_p5 = scmp.lt.u32.totalorder %s588_s22, %s801_s4 }
  0x49   :  { %p594_p6 = pnand %p592_p5, %p589_p4 }
  0x4b   :  { %597 = shalt.err (!%p594_p6)
}
  0x4c   :  { %s598_s28 = scalar_lea.vmem %s67_s18, 16  ;;  %s602_s2 = scalar_lea.vmem %s67_s18, 32 }
  0x4d   :  { %p599_p7 = scmp.ne.s32.totalorder %s67_s18, %s598_s28  ;;  %p603_p8 = scmp.lt.s32.totalorder %s67_s18, %s67_s18 }
  0x4e   :  { %p604_p9 = scmp.lt.s32.totalorder %s602_s2, %s598_s28 }
  0x50   :  { %p605_p10 = por %p604_p9, %p603_p8 }
  0x52   :  { %p606_p11 = pnand %p605_p10, %p599_p7 }
  0x54   :  { %609 = shalt.err (!%p606_p11)
}
  0x55   :  { %69 = dma.hbm_to_vmem [thread:$0]  %s801_s4, 16, %s67_s18, [#allocation9]  }
  0x56   :  { %632 = dma.done.wait [#allocation3], 128  }
  0x57   :  { %633 = vsyncadd [#allocation3], 4294967168 }
  0x58   :  { %634 = dma.done.wait [#allocation6], 2048  }
  0x59   :  { %635 = vsyncadd [#allocation6], 4294965248 }
  0x5a   :  { %636 = dma.done.wait [#allocation9], 32  }
  0x5b   :  { %637 = vsyncadd [#allocation9], 4294967264  ;;  %v647_v0 = vmov 0.0   ;;  %vm648_vm0 = vmmov 0   ;;  %v475_v1 = vld [vmem:[#allocation5] sm:$0xff]   ;;  %v476_v2 = vld [vmem:[#allocation5 + $0x8] sm:$0xff]   ;;  %v317_v39 = vlaneseq }
  0x5c   :  { %423 = vmatprep.subr.bf16.mxu0 %v647_v0  ;;  %439 = vmatprep.mubr.msk.bf16.mxu0 %vm648_vm0, %v647_v0  ;;  %v477_v3 = vld [vmem:[#allocation5 + $0x10] sm:$0xff]   ;;  %v484_v4 = vld [vmem:[#allocation7] sm:$0xff]   ;;  %v478_v5 = vld [vmem:[#allocation5 + $0x18] sm:$0xff]   ;;  %s649_s4 = smov [#allocation11]  }
  0x5d   :  { %443 = vmatprep.subr.bf16.mxu1 %v647_v0  ;;  %459 = vmatprep.mubr.msk.bf16.mxu1 %vm648_vm0, %v647_v0  ;;  %v485_v6 = vld [vmem:[#allocation7 + $0x8] sm:$0xff]   ;;  %v479_v7 = vld [vmem:[#allocation5 + $0x20] sm:$0xff]   ;;  %v486_v8 = vld [vmem:[#allocation7 + $0x10] sm:$0xff]   ;;  %v318_v40 = vand.u32 127, %v317_v39  ;;  %s371_s23 = sshll.u32 %s649_s4, 4  ;;  %s372_s23 = int_to_ptr.vmem [resolvable:$true] %s371_s23 }
  0x5e   :  { %424 = vmatpush3.bf16.msra.mxu0 %v475_v1  ;;  %444 = vmatpush3.bf16.msra.mxu1 %v484_v4  ;;  %v480_v9 = vld [vmem:[#allocation5 + $0x28] sm:$0xff]   ;;  %v481_v10 = vld [vmem:[#allocation5 + $0x30] sm:$0xff]   ;;  %v482_v11 = vld [vmem:[#allocation5 + $0x38] sm:$0xff]   ;;  %s610_s29 = scalar_lea.vmem %s372_s23, 256  ;;  %p615_p13 = scmp.lt.s32.totalorder %s372_s23, %s372_s23 }
  0x5f   :  { %425 = vmatprep.subr.bf16.mxu0 %v647_v0  ;;  %445 = vmatprep.subr.bf16.mxu1 %v647_v0  ;;  %v483_v12 = vld [vmem:[#allocation2] sm:$0xff]   ;;  %v488_v14 = vld [vmem:[#allocation7 + $0x20] sm:$0xff]   ;;  %v489_v15 = vld [vmem:[#allocation7 + $0x28] sm:$0xff]   ;;  %vm319_vm1 = vcmp.lt.s32.totalorder %v318_v40, 64  ;;  %p611_p12 = scmp.ne.s32.totalorder %s372_s23, %s610_s29  ;;  %p616_p0 = scmp.lt.s32.totalorder %s610_s29, %s610_s29 }
  0x60   :  { %v487_v13 = vld [vmem:[#allocation7 + $0x18] sm:$0xff]   ;;  %v490_v16 = vld [vmem:[#allocation7 + $0x30] sm:$0xff]   ;;  %v402_v43 = vsel %vm319_vm1, 1.0, %v647_v0  ;;  %v403_v59 = vld [vmem:[#allocation8] ss:$0 sm:$0xff] }
  0x61   :  { %v491_v17 = vld [vmem:[#allocation7 + $0x38] sm:$0xff]   ;;  %v404_v61 = vld [vmem:[#allocation10] ss:$0 sm:$0xff]  ;;  %p617_p1 = por %p616_p0, %p615_p13 }
  0x62   :  { %426 = vmatpush3.bf16.msra.mxu0 %v476_v2  ;;  %446 = vmatpush3.bf16.msra.mxu1 %v485_v6 }
  0x63   :  { %427 = vmatprep.subr.bf16.mxu0 %v647_v0  ;;  %447 = vmatprep.subr.bf16.mxu1 %v647_v0  ;;  %p618_p2 = pnand %p617_p1, %p611_p12 }
  0x66   :  { %428 = vmatpush3.bf16.msra.mxu0 %v477_v3  ;;  %448 = vmatpush3.bf16.msra.mxu1 %v486_v8 }
  0x67   :  { %429 = vmatprep.subr.bf16.mxu0 %v647_v0  ;;  %449 = vmatprep.subr.bf16.mxu1 %v647_v0 }
  0x6a   :  { %430 = vmatpush3.bf16.msra.mxu0 %v478_v5  ;;  %450 = vmatpush3.bf16.msra.mxu1 %v487_v13 }
  0x6b   :  { %431 = vmatprep.subr.bf16.mxu0 %v647_v0  ;;  %451 = vmatprep.subr.bf16.mxu1 %v647_v0 }
  0x6e   :  { %432 = vmatpush3.bf16.msra.mxu0 %v479_v7  ;;  %452 = vmatpush3.bf16.msra.mxu1 %v488_v14 }
  0x6f   :  { %433 = vmatprep.subr.bf16.mxu0 %v647_v0  ;;  %453 = vmatprep.subr.bf16.mxu1 %v647_v0 }
  0x72   :  { %434 = vmatpush3.bf16.msra.mxu0 %v480_v9  ;;  %454 = vmatpush3.bf16.msra.mxu1 %v489_v15 }
  0x73   :  { %435 = vmatprep.subr.bf16.mxu0 %v647_v0  ;;  %455 = vmatprep.subr.bf16.mxu1 %v647_v0 }
  0x76   :  { %436 = vmatpush3.bf16.msra.mxu0 %v481_v10  ;;  %456 = vmatpush3.bf16.msra.mxu1 %v490_v16 }
  0x77   :  { %437 = vmatprep.subr.bf16.mxu0 %v647_v0  ;;  %457 = vmatprep.subr.bf16.mxu1 %v647_v0 }
  0x7a   :  { %438 = vmatpush3.bf16.msra.mxu0 %v482_v11  ;;  %458 = vmatpush3.bf16.msra.mxu1 %v491_v17 }
  0x7d   :  { %440 = vmatmul.mubr.bf16.vlgmr.msra.gmra.mrb[0].mxu0 %v483_v12 }
 0x150   :  { %v192_v18 = vpop.f32.mrb[0].mxu0 }
 0x151   :  { %v201_v19 = vmul.f32 0.70710677, %v192_v18  ;;  %v441_v20 = vpop.f32.mrb[1].mxu0  ;;  %v199_v27 = vmul.f32 0.5, %v192_v18 }
 0x152   :  { %v195_v21 = vpop.f32.mrb[2].mxu0 }
 0x153   :  { %492 = verf.f32 %v201_v19  ;;  %v202_v22 = vmul.f32 0.70710677, %v195_v21  ;;  %v442_v23 = vpop.f32.mrb[3].mxu0  ;;  %v200_v28 = vmul.f32 0.5, %v195_v21 }
 0x155   :  { %494 = verf.f32 %v202_v22 }
 0x15d   :  { %v493_v24 = vpop.eup %492 }
 0x15e   :  { %v205_v25 = vadd.f32 1.0, %v493_v24 }
 0x15f   :  { %v495_v26 = vpop.eup %494 }
 0x160   :  { %v206_v29 = vadd.f32 1.0, %v495_v26  ;;  %v207_v30 = vmul.f32 %v205_v25, %v199_v27 }
 0x162   :  { %v208_v31 = vmul.f32 %v206_v29, %v200_v28 }
 0x164   :  { %v209_v32 = vpack.c.bf16 %v208_v31, %v207_v30 }
 0x166   :  { %460 = vmatmul.mubr.bf16.vlgmr.msra.gmra.mrb[0].mxu1 %v209_v32 }
 0x239   :  { %v308_v33 = vpop.f32.mrb[0].mxu1 }
 0x23a   :  { %v315_v34 = vadd.f32 %v308_v33, %v192_v18  ;;  %v461_v35 = vpop.f32.mrb[1].mxu1 }
 0x23b   :  { %v311_v36 = vpop.f32.mrb[2].mxu1 }
 0x23c   :  { %v316_v37 = vadd.f32 %v311_v36, %v195_v21  ;;  %322 = vadd.xlane.f32.xlu0 %v315_v34  ;;  %v462_v38 = vpop.f32.mrb[3].mxu1 }
 0x240   :  { %324 = vadd.xlane.f32.xlu0 %v316_v37 }
 0x2c9   :  { %v323_v41 = vpop.xlane.xlu0 %322 }
 0x2ca   :  { %v326_v42 = vmul.f32 0.015625, %v323_v41 }
 0x2cc   :  { %v328_v44 = vsub.f32 %v315_v34, %v326_v42 }
 0x2cd   :  { %v325_v45 = vpop.xlane.xlu0 %324 }
 0x2ce   :  { %v327_v46 = vmul.f32 0.015625, %v325_v45  ;;  %v330_v47 = vmul.f32 %v402_v43, %v328_v44 }
 0x2d0   :  { %v329_v48 = vsub.f32 %v316_v37, %v327_v46  ;;  %v332_v49 = vmul.f32 %v330_v47, %v330_v47 }
 0x2d2   :  { %334 = vadd.xlane.f32.xlu1 %v332_v49  ;;  %v331_v50 = vmul.f32 %v402_v43, %v329_v48 }
 0x2d4   :  { %v333_v51 = vmul.f32 %v331_v50, %v331_v50 }
 0x2d6   :  { %336 = vadd.xlane.f32.xlu1 %v333_v51 }
 0x35f   :  { %v335_v52 = vpop.xlane.xlu1 %334 }
 0x360   :  { %v338_v53 = vmul.f32 0.015625, %v335_v52 }
 0x362   :  { %v340_v54 = vadd.f32 1e-05, %v338_v53 }
 0x363   :  { %v337_v55 = vpop.xlane.xlu1 %336 }
 0x364   :  { %496 = vrsqrt.f32 %v340_v54  ;;  %v339_v56 = vmul.f32 0.015625, %v337_v55 }
 0x366   :  { %v341_v57 = vadd.f32 1e-05, %v339_v56 }
 0x368   :  { %498 = vrsqrt.f32 %v341_v57 }
 0x36e   :  { %v497_v58 = vpop.eup %496 }
 0x36f   :  { %v344_v60 = vmul.f32 %v497_v58, %v330_v47 }
 0x371   :  { %v353_v62 = vmul.f32 %v403_v59, %v344_v60 }
 0x372   :  { %v499_v63 = vpop.eup %498 }
 0x373   :  { %v345_v0 = vmul.f32 %v499_v63, %v331_v50  ;;  %v362_v1 = vadd.f32 %v404_v61, %v353_v62 }
 0x375   :  { %v354_v2 = vmul.f32 %v403_v59, %v345_v0  ;;  %364 = vst [vmem:[#allocation11] sm:$0xff] %v362_v1 }
 0x377   :  { %v363_v3 = vadd.f32 %v404_v61, %v354_v2 }
 0x379   :  { %365 = vst [vmem:[#allocation11 + $0x8] sm:$0xff] %v363_v3 }
 0x37a   :  { %621 = shalt.err (!%p618_p2)
}
 0x37b   :  { %s622_s21 = scalar_lea.hbm %s802_s5, 256 }
 0x37c   :  { %p623_p3 = scmp.ne.s32.totalorder %s802_s5, %s622_s21  ;;  %p626_p4 = scmp.lt.u32.totalorder %s622_s21, %s802_s5 }
 0x37e   :  { %p628_p5 = pnand %p626_p4, %p623_p3 }
 0x380   :  { %631 = shalt.err (!%p628_p5)
}
 0x381   :  { %s650_s12 = smov 128   ;;  %s651_s13 = smov 8  }
 0x382   :  { %377 = dma.vmem_to_hbm [thread:$0]  %s372_s23, 256, %s802_s5, [#allocation4], %s650_s12, %s650_s12, %s651_s13  }
 0x383   :  { %638 = dma.done.wait [#allocation4], 256  }
 0x384   :  { %639 = vsyncadd [#allocation4], 4294967040 }
 0x385   :  { %381 = vsyncpa [#allocation3], 1 }
 0x386   :  { %382 = vsyncpa [#allocation6], 1 }
 0x387   :  { %383 = vsyncpa [#allocation9], 1 }
 0x388   :  { %384 = vsyncpa [#allocation4], 1 }

</bundles_post_ra>
